<compile_context>
chip_gen: v5e
topology: v5e:2x2
jax: 0.10.0
libtpu: 0.0.40
codegen_flags: <defaults>
</compile_context>

<pallas_src>
import functools

import jax
import jax.numpy as jnp
from jax import lax
from jax.experimental import pallas as pl
from jax.experimental.pallas import tpu as pltpu

LANES = 128
SUBLANES = 8
MAX_BLOCK_ROWS = 4096  # (4096, 128) f32 = 2 MiB per input block
NUM_SUMS = 9  # [n_mask, a1, a2, a3, sq_err, log_abs_sum, log_valid_cnt, abs_rel, sq_rel]


def _round_up(x, m):
    return ((x + m - 1) // m) * m


def _num_tensorcores():
    """Best-effort TensorCores-per-device count (1 on v5e/v6e, 2 on v7x)."""
    try:
        info = pltpu.get_tpu_info()
        for attr in ("num_cores", "core_count", "tensorcores_per_chip"):
            v = getattr(info, attr, None)
            if isinstance(v, int) and v > 0:
                return v
    except Exception:
        pass
    try:
        dev = jax.devices()[0]
        if getattr(dev, "platform", "") == "tpu":
            v = getattr(dev, "num_cores", None)
            if isinstance(v, int) and v > 0:
                return v
    except Exception:
        pass
    return 1


def _metrics_kernel(pred_ref, gt_ref, out_ref, *, tolerance, block_rows,
                    steps_per_split, nblocks, total_rows,
                    has_partial_tail, has_dup):
    c = pl.program_id(0)  # split index (one per TensorCore when available)
    i = pl.program_id(1)  # reduction step within the split

    @pl.when(i == 0)
    def _init():
        out_ref[...] = jnp.zeros_like(out_ref)

    # Intended (unclamped) block index; the DMA index_map is clamped, so duplicate /
    # partial blocks are detected from `b` and handled below.
    b = c * steps_per_split + i

    def accumulate(apply_row_mask):
        pred = pred_ref[...].astype(jnp.float32)
        gt = gt_ref[...].astype(jnp.float32)

        one = jnp.float32(1.0)
        zero = jnp.float32(0.0)
        two = jnp.float32(2.0)
        f32 = jnp.float32

        mask = gt > tolerance
        if apply_row_mask:
            # Cold path (partial tail block only): DMA-padded rows hold garbage.
            row_ids = b * block_rows + lax.broadcasted_iota(
                jnp.int32, (block_rows, LANES), 0)
            mask = jnp.logical_and(mask, row_ids < total_rows)

        # Safe values keep every lane finite; masked-out lanes then contribute exact
        # zeros to every sum without extra selects (diff == 0; counts gated below).
        pred_s = jnp.where(mask, pred, one)
        gt_s = jnp.where(mask, gt, one)

        # Single reciprocal per element: EUP approx estimate + one Newton step.
        inv0 = pl.reciprocal(gt_s, approx=True)
        inv_gt = inv0 * (two - gt_s * inv0)

        diff = gt_s - pred_s
        absdiff = jnp.abs(diff)
        sqdiff = diff * diff

        # delta thresholds, division-free:
        #   max(gt/pred, pred/gt) < T  <=>  max(gt,pred) < T * min(gt,pred)  (both > 0)
        # (diverges from the torch module only for pred <= 0 on masked lanes, which the
        #  original would count toward a1/a2/a3; impossible for physical depth preds.)
        mx = jnp.maximum(gt_s, pred_s)
        mn = jnp.where(mask, jnp.minimum(gt_s, pred_s), zero)

        # rmse_log in the module is nanmean(|log gt - log pred|); reuse inv_gt.
        log_abs = jnp.abs(jnp.log(pred_s * inv_gt))
        valid_log = jnp.logical_and(mask, jnp.logical_not(jnp.isnan(log_abs)))

        terms = (
            mask.astype(f32),                            # 0: n_mask
            (mx < f32(1.25) * mn).astype(f32),           # 1: a1 count
            (mx < f32(1.25 ** 2) * mn).astype(f32),      # 2: a2 count
            (mx < f32(1.25 ** 3) * mn).astype(f32),      # 3: a3 count
            sqdiff,                                      # 4: sum (gt-pred)^2
            jnp.where(valid_log, log_abs, zero),         # 5: sum |log gt - log pred|
            valid_log.astype(f32),                       # 6: nanmean denominator
            absdiff * inv_gt,                            # 7: sum |gt-pred|/gt
            sqdiff * inv_gt,                             # 8: sum (gt-pred)^2/gt
        )

        # Pure-VPU accumulation into the resident lane-dense output block; cross-lane
        # reduction + scalar extraction happen in JAX after the kernel.
        for k, t in enumerate(terms):
            out_ref[0, k] += jnp.sum(t.reshape(-1, SUBLANES, LANES), axis=0)

    if has_partial_tail or has_dup:
        full_limit = nblocks - 1 if has_partial_tail else nblocks

        @pl.when(b < full_limit)
        def _hot():
            accumulate(apply_row_mask=False)

        if has_partial_tail:
            @pl.when(b == nblocks - 1)
            def _tail():
                accumulate(apply_row_mask=True)
        # b >= nblocks (clamped duplicate block): no compute at all.
    else:
        accumulate(apply_row_mask=False)


def _flatten_for_kernel(x):
    x = x.reshape(-1)
    if x.dtype not in (jnp.dtype(jnp.float32), jnp.dtype(jnp.bfloat16)):
        x = x.astype(jnp.float32)
    return x


def depth_metrics(pred, gt, tolerance=0.1):
    """Returns (abs_rel, sq_rel, rmse, rmse_log, a1, a2, a3) as f32 scalars."""
    pred_f = _flatten_for_kernel(pred)
    gt_f = _flatten_for_kernel(gt)
    n = pred_f.shape[0]
    assert gt_f.shape[0] == n

    # Copy-free (rows, 128) view whenever numel % 128 == 0.  Only a ragged-by-lane
    # tail (<128 elements) forces a small pad; gt = -inf never passes the mask.
    # TODO(synk): a 1-D BlockSpec path could make the numel % 128 != 0 case copy-free too.
    n_pad = (-n) % LANES
    if n_pad:
        pred_f = jnp.concatenate([pred_f, jnp.ones((n_pad,), pred_f.dtype)])
        gt_f = jnp.concatenate([gt_f, jnp.full((n_pad,), -jnp.inf, gt_f.dtype)])

    rows = (n + n_pad) // LANES
    pred2 = pred_f.reshape(rows, LANES)
    gt2 = gt_f.reshape(rows, LANES)

    block_rows = min(MAX_BLOCK_ROWS, _round_up(rows, SUBLANES))
    nblocks = int(pl.cdiv(rows, block_rows))

    ncores = _num_tensorcores()
    nsplit = max(1, min(ncores, nblocks))  # 1 on v5e/v6e; multi-core split on v7x
    steps = int(pl.cdiv(nblocks, nsplit))
    has_dup = nsplit * steps > nblocks
    has_partial = (rows % block_rows) != 0

    def in_map(c, i):
        # Clamp so the DMA never starts past the end; duplicate blocks are skipped and
        # the partial tail block is row-masked inside the kernel.
        return (jnp.minimum(c * steps + i, nblocks - 1), 0)

    partial_sums = pl.pallas_call(
        functools.partial(
            _metrics_kernel,
            tolerance=float(tolerance),
            block_rows=block_rows,
            steps_per_split=steps,
            nblocks=nblocks,
            total_rows=rows,
            has_partial_tail=has_partial,
            has_dup=has_dup,
        ),
        out_shape=jax.ShapeDtypeStruct((nsplit, NUM_SUMS, SUBLANES, LANES), jnp.float32),
        grid=(nsplit, steps),
        in_specs=[
            pl.BlockSpec((block_rows, LANES), in_map),
            pl.BlockSpec((block_rows, LANES), in_map),
        ],
        out_specs=pl.BlockSpec((1, NUM_SUMS, SUBLANES, LANES),
                               lambda c, i: (c, 0, 0, 0)),
        compiler_params=pltpu.CompilerParams(
            # TODO(synk): on v7x, confirm the split lands on both TensorCores; switch
            # this axis to pltpu.CORE_PARALLEL if a profile shows one idle TC.
            dimension_semantics=("parallel", "arbitrary"),
            vmem_limit_bytes=32 * 1024 * 1024,
        ),
    )(pred2, gt2)

    sums = jnp.sum(partial_sums, axis=(0, 2, 3))

    n_mask = sums[0]
    abs_rel = sums[7] / n_mask
    sq_rel = sums[8] / n_mask
    rmse = jnp.sqrt(sums[4] / n_mask)
    rmse_log = sums[5] / sums[6]  # nanmean of |log gt - log pred| (module semantics)
    a1 = sums[1] / n_mask
    a2 = sums[2] / n_mask
    a3 = sums[3] / n_mask
    return (abs_rel, sq_rel, rmse, rmse_log, a1, a2, a3)


def depth_metrics_ref(pred, gt, tolerance=0.1):
    """Pure-JAX reference mirroring the PyTorch module semantics."""
    pred = pred.reshape(-1).astype(jnp.float32)
    gt = gt.reshape(-1).astype(jnp.float32)
    mask = gt > tolerance
    n = jnp.sum(mask.astype(jnp.float32))

    pred_s = jnp.where(mask, pred, 1.0)
    gt_s = jnp.where(mask, gt, 1.0)

    def mmean(x):
        return jnp.sum(jnp.where(mask, x, 0.0)) / n

    thresh = jnp.maximum(gt_s / pred_s, pred_s / gt_s)
    a1 = mmean((thresh < 1.25).astype(jnp.float32))
    a2 = mmean((thresh < 1.25 ** 2).astype(jnp.float32))
    a3 = mmean((thresh < 1.25 ** 3).astype(jnp.float32))

    diff = gt - pred
    rmse = jnp.sqrt(mmean(diff * diff))

    log_abs = jnp.abs(jnp.log(gt_s) - jnp.log(pred_s))
    valid = jnp.logical_and(mask, jnp.logical_not(jnp.isnan(log_abs)))
    rmse_log = jnp.sum(jnp.where(valid, log_abs, 0.0)) / jnp.sum(
        valid.astype(jnp.float32))

    abs_rel = mmean(jnp.abs(diff) / gt_s)
    sq_rel = mmean(diff * diff / gt_s)
    return (abs_rel, sq_rel, rmse, rmse_log, a1, a2, a3)


if __name__ == "__main__":
    key = jax.random.PRNGKey(0)
    names = ("abs_rel", "sq_rel", "rmse", "rmse_log", "a1", "a2", "a3")

    test_shapes = [
        (2, 1, 32, 32),     # single full block, copy-free path, no tail masking
        (2, 1, 256, 320),   # single large block (rows=1280), copy-free path
        (2, 2, 512, 320),   # multi-block: exercises the hot/cold partial-tail paths
        (3, 1, 25, 37),     # numel % 128 != 0: exercises the small lane-pad path
    ]
    for shape in test_shapes:
        key, k_pred, k_gt = jax.random.split(key, 3)
        # Depth-map-like NCHW inputs; some gt values fall below tolerance -> masked out.
        pred = jax.random.uniform(k_pred, shape, jnp.float32, minval=0.1, maxval=10.0)
        gt = jax.random.uniform(k_gt, shape, jnp.float32, minval=0.0, maxval=10.0)

        out = jax.block_until_ready(depth_metrics(pred, gt, tolerance=0.1))
        ref = depth_metrics_ref(pred, gt, tolerance=0.1)
        for name, o, r in zip(names, out, ref):
            assert jnp.allclose(o, r, rtol=1e-4, atol=1e-5), (shape, name, o, r)

    print("KERNEL_OK")
</pallas_src>

<mosaic_0001>
module attributes {stable_mosaic.version = 11 : i64} {
  func.func @_metrics_kernel(%arg0: i32, %arg1: i32, %arg2: memref<16x128xf32, #tpu.memory_space<vmem>>, %arg3: memref<16x128xf32, #tpu.memory_space<vmem>>, %arg4: memref<1x9x8x128xf32, #tpu.memory_space<vmem>>) attributes {dimension_semantics = [#tpu.dimension_semantics<parallel>, #tpu.dimension_semantics<arbitrary>], iteration_bounds = array<i64: 1, 1>, scalar_prefetch = 0 : i64, scratch_operands = 0 : i64, tpu.core_type = #tpu.core_type<tc>, window_params = [{transform_indices = @transform_0, window_bounds = array<i64: 16, 128>}, {transform_indices = @transform_1, window_bounds = array<i64: 16, 128>}, {transform_indices = @transform_2, window_bounds = array<i64: 1, 9, 8, 128>}]} {
    %c0_i32 = arith.constant 0 : i32
    %0 = arith.cmpi eq, %arg1, %c0_i32 : i32
    %1 = arith.extui %0 : i1 to i32
    %c0_i32_0 = arith.constant 0 : i32
    %2 = arith.cmpi ne, %1, %c0_i32_0 : i32
    scf.if %2 {
      %cst_86 = arith.constant 0.000000e+00 : f32
      %124 = vector.broadcast %cst_86 : f32 to vector<1x9x8x128xf32>
      %c0_87 = arith.constant 0 : index
      %c0_88 = arith.constant 0 : index
      %c0_89 = arith.constant 0 : index
      %c0_90 = arith.constant 0 : index
      %125 = vector.load %arg4[%c0_87, %c0_88, %c0_89, %c0_90] : memref<1x9x8x128xf32, #tpu.memory_space<vmem>>, vector<1x9x8x128xf32>
      tpu.vector_store %arg4[%c0_87, %c0_88, %c0_89, %c0_90], %124 {strides = array<i32>} : memref<1x9x8x128xf32, #tpu.memory_space<vmem>>, vector<1x9x8x128xf32>,
    } else {
    }
    %c0 = arith.constant 0 : index
    %c0_1 = arith.constant 0 : index
    %3 = vector.load %arg2[%c0, %c0_1] : memref<16x128xf32, #tpu.memory_space<vmem>>, vector<16x128xf32>
    %c0_2 = arith.constant 0 : index
    %c0_3 = arith.constant 0 : index
    %4 = vector.load %arg3[%c0_2, %c0_3] : memref<16x128xf32, #tpu.memory_space<vmem>>, vector<16x128xf32>
    %cst = arith.constant 1.000000e-01 : f32
    %5 = vector.broadcast %cst : f32 to vector<16x128xf32>
    %6 = arith.cmpf ogt, %4, %5 : vector<16x128xf32>
    %cst_4 = arith.constant 1.000000e+00 : f32
    %7 = vector.broadcast %cst_4 : f32 to vector<16x128xf32>
    %8 = arith.select %6, %3, %7 : vector<16x128xi1>, vector<16x128xf32>
    %cst_5 = arith.constant 1.000000e+00 : f32
    %9 = vector.broadcast %cst_5 : f32 to vector<16x128xf32>
    %10 = arith.select %6, %4, %9 : vector<16x128xi1>, vector<16x128xf32>
    %11 = tpu.reciprocal %10 {approx = true} : vector<16x128xf32> -> vector<16x128xf32>
    %12 = arith.mulf %10, %11 : vector<16x128xf32>
    %cst_6 = arith.constant 2.000000e+00 : f32
    %13 = vector.broadcast %cst_6 : f32 to vector<16x128xf32>
    %14 = arith.subf %13, %12 : vector<16x128xf32>
    %15 = arith.mulf %11, %14 : vector<16x128xf32>
    %16 = arith.subf %10, %8 : vector<16x128xf32>
    %17 = math.absf %16 : vector<16x128xf32>
    %18 = arith.mulf %16, %16 : vector<16x128xf32>
    %19 = arith.maximumf %10, %8 : vector<16x128xf32>
    %20 = arith.minimumf %10, %8 : vector<16x128xf32>
    %cst_7 = arith.constant 0.000000e+00 : f32
    %21 = vector.broadcast %cst_7 : f32 to vector<16x128xf32>
    %22 = arith.select %6, %20, %21 : vector<16x128xi1>, vector<16x128xf32>
    %23 = arith.mulf %8, %15 : vector<16x128xf32>
    %24 = math.log %23 : vector<16x128xf32>
    %25 = math.absf %24 : vector<16x128xf32>
    %26 = arith.cmpf one, %25, %25 : vector<16x128xf32>
    %cst_8 = arith.constant dense<true> : vector<16x128xi1>
    %27 = arith.xori %26, %cst_8 : vector<16x128xi1>
    %28 = arith.andi %6, %27 : vector<16x128xi1>
    %29 = arith.extui %6 : vector<16x128xi1> to vector<16x128xi32>
    %30 = arith.sitofp %29 : vector<16x128xi32> to vector<16x128xf32>
    %cst_9 = arith.constant 1.250000e+00 : f32
    %31 = vector.broadcast %cst_9 : f32 to vector<16x128xf32>
    %32 = arith.mulf %31, %22 : vector<16x128xf32>
    %33 = arith.cmpf olt, %19, %32 : vector<16x128xf32>
    %34 = arith.extui %33 : vector<16x128xi1> to vector<16x128xi32>
    %35 = arith.sitofp %34 : vector<16x128xi32> to vector<16x128xf32>
    %cst_10 = arith.constant 1.562500e+00 : f32
    %36 = vector.broadcast %cst_10 : f32 to vector<16x128xf32>
    %37 = arith.mulf %36, %22 : vector<16x128xf32>
    %38 = arith.cmpf olt, %19, %37 : vector<16x128xf32>
    %39 = arith.extui %38 : vector<16x128xi1> to vector<16x128xi32>
    %40 = arith.sitofp %39 : vector<16x128xi32> to vector<16x128xf32>
    %cst_11 = arith.constant 1.953125 : f32
    %41 = vector.broadcast %cst_11 : f32 to vector<16x128xf32>
    %42 = arith.mulf %41, %22 : vector<16x128xf32>
    %43 = arith.cmpf olt, %19, %42 : vector<16x128xf32>
    %44 = arith.extui %43 : vector<16x128xi1> to vector<16x128xi32>
    %45 = arith.sitofp %44 : vector<16x128xi32> to vector<16x128xf32>
    %cst_12 = arith.constant 0.000000e+00 : f32
    %46 = vector.broadcast %cst_12 : f32 to vector<16x128xf32>
    %47 = arith.select %28, %25, %46 : vector<16x128xi1>, vector<16x128xf32>
    %48 = arith.extui %28 : vector<16x128xi1> to vector<16x128xi32>
    %49 = arith.sitofp %48 : vector<16x128xi32> to vector<16x128xf32>
    %50 = arith.mulf %17, %15 : vector<16x128xf32>
    %51 = arith.mulf %18, %15 : vector<16x128xf32>
    %c0_13 = arith.constant 0 : index
    %c0_14 = arith.constant 0 : index
    %c0_15 = arith.constant 0 : index
    %c0_16 = arith.constant 0 : index
    %52 = vector.load %arg4[%c0_13, %c0_14, %c0_15, %c0_16] : memref<1x9x8x128xf32, #tpu.memory_space<vmem>>, vector<1x1x8x128xf32>
    %53 = vector.shape_cast %52 : vector<1x1x8x128xf32> to vector<8x128xf32>
    %54 = vector.shape_cast %30 : vector<16x128xf32> to vector<2x8x128xf32>
    %cst_17 = arith.constant dense<0.000000e+00> : vector<8x128xf32>
    %55 = vector.multi_reduction <add>, %54, %cst_17 [0] : vector<2x8x128xf32> to vector<8x128xf32>
    %56 = arith.addf %53, %55 : vector<8x128xf32>
    %c0_18 = arith.constant 0 : index
    %c0_19 = arith.constant 0 : index
    %c0_20 = arith.constant 0 : index
    %c0_21 = arith.constant 0 : index
    %57 = vector.load %arg4[%c0_18, %c0_19, %c0_20, %c0_21] : memref<1x9x8x128xf32, #tpu.memory_space<vmem>>, vector<1x1x8x128xf32>
    %58 = vector.shape_cast %57 : vector<1x1x8x128xf32> to vector<8x128xf32>
    %59 = vector.shape_cast %56 : vector<8x128xf32> to vector<1x1x8x128xf32>
    tpu.vector_store %arg4[%c0_18, %c0_19, %c0_20, %c0_21], %59 {strides = array<i32>} : memref<1x9x8x128xf32, #tpu.memory_space<vmem>>, vector<1x1x8x128xf32>,
    %c0_22 = arith.constant 0 : index
    %c1 = arith.constant 1 : index
    %c0_23 = arith.constant 0 : index
    %c0_24 = arith.constant 0 : index
    %60 = vector.load %arg4[%c0_22, %c1, %c0_23, %c0_24] : memref<1x9x8x128xf32, #tpu.memory_space<vmem>>, vector<1x1x8x128xf32>
    %61 = vector.shape_cast %60 : vector<1x1x8x128xf32> to vector<8x128xf32>
    %62 = vector.shape_cast %35 : vector<16x128xf32> to vector<2x8x128xf32>
    %cst_25 = arith.constant dense<0.000000e+00> : vector<8x128xf32>
    %63 = vector.multi_reduction <add>, %62, %cst_25 [0] : vector<2x8x128xf32> to vector<8x128xf32>
    %64 = arith.addf %61, %63 : vector<8x128xf32>
    %c0_26 = arith.constant 0 : index
    %c1_27 = arith.constant 1 : index
    %c0_28 = arith.constant 0 : index
    %c0_29 = arith.constant 0 : index
    %65 = vector.load %arg4[%c0_26, %c1_27, %c0_28, %c0_29] : memref<1x9x8x128xf32, #tpu.memory_space<vmem>>, vector<1x1x8x128xf32>
    %66 = vector.shape_cast %65 : vector<1x1x8x128xf32> to vector<8x128xf32>
    %67 = vector.shape_cast %64 : vector<8x128xf32> to vector<1x1x8x128xf32>
    tpu.vector_store %arg4[%c0_26, %c1_27, %c0_28, %c0_29], %67 {strides = array<i32>} : memref<1x9x8x128xf32, #tpu.memory_space<vmem>>, vector<1x1x8x128xf32>,
    %c0_30 = arith.constant 0 : index
    %c2 = arith.constant 2 : index
    %c0_31 = arith.constant 0 : index
    %c0_32 = arith.constant 0 : index
    %68 = vector.load %arg4[%c0_30, %c2, %c0_31, %c0_32] : memref<1x9x8x128xf32, #tpu.memory_space<vmem>>, vector<1x1x8x128xf32>
    %69 = vector.shape_cast %68 : vector<1x1x8x128xf32> to vector<8x128xf32>
    %70 = vector.shape_cast %40 : vector<16x128xf32> to vector<2x8x128xf32>
    %cst_33 = arith.constant dense<0.000000e+00> : vector<8x128xf32>
    %71 = vector.multi_reduction <add>, %70, %cst_33 [0] : vector<2x8x128xf32> to vector<8x128xf32>
    %72 = arith.addf %69, %71 : vector<8x128xf32>
    %c0_34 = arith.constant 0 : index
    %c2_35 = arith.constant 2 : index
    %c0_36 = arith.constant 0 : index
    %c0_37 = arith.constant 0 : index
    %73 = vector.load %arg4[%c0_34, %c2_35, %c0_36, %c0_37] : memref<1x9x8x128xf32, #tpu.memory_space<vmem>>, vector<1x1x8x128xf32>
    %74 = vector.shape_cast %73 : vector<1x1x8x128xf32> to vector<8x128xf32>
    %75 = vector.shape_cast %72 : vector<8x128xf32> to vector<1x1x8x128xf32>
    tpu.vector_store %arg4[%c0_34, %c2_35, %c0_36, %c0_37], %75 {strides = array<i32>} : memref<1x9x8x128xf32, #tpu.memory_space<vmem>>, vector<1x1x8x128xf32>,
    %c0_38 = arith.constant 0 : index
    %c3 = arith.constant 3 : index
    %c0_39 = arith.constant 0 : index
    %c0_40 = arith.constant 0 : index
    %76 = vector.load %arg4[%c0_38, %c3, %c0_39, %c0_40] : memref<1x9x8x128xf32, #tpu.memory_space<vmem>>, vector<1x1x8x128xf32>
    %77 = vector.shape_cast %76 : vector<1x1x8x128xf32> to vector<8x128xf32>
    %78 = vector.shape_cast %45 : vector<16x128xf32> to vector<2x8x128xf32>
    %cst_41 = arith.constant dense<0.000000e+00> : vector<8x128xf32>
    %79 = vector.multi_reduction <add>, %78, %cst_41 [0] : vector<2x8x128xf32> to vector<8x128xf32>
    %80 = arith.addf %77, %79 : vector<8x128xf32>
    %c0_42 = arith.constant 0 : index
    %c3_43 = arith.constant 3 : index
    %c0_44 = arith.constant 0 : index
    %c0_45 = arith.constant 0 : index
    %81 = vector.load %arg4[%c0_42, %c3_43, %c0_44, %c0_45] : memref<1x9x8x128xf32, #tpu.memory_space<vmem>>, vector<1x1x8x128xf32>
    %82 = vector.shape_cast %81 : vector<1x1x8x128xf32> to vector<8x128xf32>
    %83 = vector.shape_cast %80 : vector<8x128xf32> to vector<1x1x8x128xf32>
    tpu.vector_store %arg4[%c0_42, %c3_43, %c0_44, %c0_45], %83 {strides = array<i32>} : memref<1x9x8x128xf32, #tpu.memory_space<vmem>>, vector<1x1x8x128xf32>,
    %c0_46 = arith.constant 0 : index
    %c4 = arith.constant 4 : index
    %c0_47 = arith.constant 0 : index
    %c0_48 = arith.constant 0 : index
    %84 = vector.load %arg4[%c0_46, %c4, %c0_47, %c0_48] : memref<1x9x8x128xf32, #tpu.memory_space<vmem>>, vector<1x1x8x128xf32>
    %85 = vector.shape_cast %84 : vector<1x1x8x128xf32> to vector<8x128xf32>
    %86 = vector.shape_cast %18 : vector<16x128xf32> to vector<2x8x128xf32>
    %cst_49 = arith.constant dense<0.000000e+00> : vector<8x128xf32>
    %87 = vector.multi_reduction <add>, %86, %cst_49 [0] : vector<2x8x128xf32> to vector<8x128xf32>
    %88 = arith.addf %85, %87 : vector<8x128xf32>
    %c0_50 = arith.constant 0 : index
    %c4_51 = arith.constant 4 : index
    %c0_52 = arith.constant 0 : index
    %c0_53 = arith.constant 0 : index
    %89 = vector.load %arg4[%c0_50, %c4_51, %c0_52, %c0_53] : memref<1x9x8x128xf32, #tpu.memory_space<vmem>>, vector<1x1x8x128xf32>
    %90 = vector.shape_cast %89 : vector<1x1x8x128xf32> to vector<8x128xf32>
    %91 = vector.shape_cast %88 : vector<8x128xf32> to vector<1x1x8x128xf32>
    tpu.vector_store %arg4[%c0_50, %c4_51, %c0_52, %c0_53], %91 {strides = array<i32>} : memref<1x9x8x128xf32, #tpu.memory_space<vmem>>, vector<1x1x8x128xf32>,
    %c0_54 = arith.constant 0 : index
    %c5 = arith.constant 5 : index
    %c0_55 = arith.constant 0 : index
    %c0_56 = arith.constant 0 : index
    %92 = vector.load %arg4[%c0_54, %c5, %c0_55, %c0_56] : memref<1x9x8x128xf32, #tpu.memory_space<vmem>>, vector<1x1x8x128xf32>
    %93 = vector.shape_cast %92 : vector<1x1x8x128xf32> to vector<8x128xf32>
    %94 = vector.shape_cast %47 : vector<16x128xf32> to vector<2x8x128xf32>
    %cst_57 = arith.constant dense<0.000000e+00> : vector<8x128xf32>
    %95 = vector.multi_reduction <add>, %94, %cst_57 [0] : vector<2x8x128xf32> to vector<8x128xf32>
    %96 = arith.addf %93, %95 : vector<8x128xf32>
    %c0_58 = arith.constant 0 : index
    %c5_59 = arith.constant 5 : index
    %c0_60 = arith.constant 0 : index
    %c0_61 = arith.constant 0 : index
    %97 = vector.load %arg4[%c0_58, %c5_59, %c0_60, %c0_61] : memref<1x9x8x128xf32, #tpu.memory_space<vmem>>, vector<1x1x8x128xf32>
    %98 = vector.shape_cast %97 : vector<1x1x8x128xf32> to vector<8x128xf32>
    %99 = vector.shape_cast %96 : vector<8x128xf32> to vector<1x1x8x128xf32>
    tpu.vector_store %arg4[%c0_58, %c5_59, %c0_60, %c0_61], %99 {strides = array<i32>} : memref<1x9x8x128xf32, #tpu.memory_space<vmem>>, vector<1x1x8x128xf32>,
    %c0_62 = arith.constant 0 : index
    %c6 = arith.constant 6 : index
    %c0_63 = arith.constant 0 : index
    %c0_64 = arith.constant 0 : index
    %100 = vector.load %arg4[%c0_62, %c6, %c0_63, %c0_64] : memref<1x9x8x128xf32, #tpu.memory_space<vmem>>, vector<1x1x8x128xf32>
    %101 = vector.shape_cast %100 : vector<1x1x8x128xf32> to vector<8x128xf32>
    %102 = vector.shape_cast %49 : vector<16x128xf32> to vector<2x8x128xf32>
    %cst_65 = arith.constant dense<0.000000e+00> : vector<8x128xf32>
    %103 = vector.multi_reduction <add>, %102, %cst_65 [0] : vector<2x8x128xf32> to vector<8x128xf32>
    %104 = arith.addf %101, %103 : vector<8x128xf32>
    %c0_66 = arith.constant 0 : index
    %c6_67 = arith.constant 6 : index
    %c0_68 = arith.constant 0 : index
    %c0_69 = arith.constant 0 : index
    %105 = vector.load %arg4[%c0_66, %c6_67, %c0_68, %c0_69] : memref<1x9x8x128xf32, #tpu.memory_space<vmem>>, vector<1x1x8x128xf32>
    %106 = vector.shape_cast %105 : vector<1x1x8x128xf32> to vector<8x128xf32>
    %107 = vector.shape_cast %104 : vector<8x128xf32> to vector<1x1x8x128xf32>
    tpu.vector_store %arg4[%c0_66, %c6_67, %c0_68, %c0_69], %107 {strides = array<i32>} : memref<1x9x8x128xf32, #tpu.memory_space<vmem>>, vector<1x1x8x128xf32>,
    %c0_70 = arith.constant 0 : index
    %c7 = arith.constant 7 : index
    %c0_71 = arith.constant 0 : index
    %c0_72 = arith.constant 0 : index
    %108 = vector.load %arg4[%c0_70, %c7, %c0_71, %c0_72] : memref<1x9x8x128xf32, #tpu.memory_space<vmem>>, vector<1x1x8x128xf32>
    %109 = vector.shape_cast %108 : vector<1x1x8x128xf32> to vector<8x128xf32>
    %110 = vector.shape_cast %50 : vector<16x128xf32> to vector<2x8x128xf32>
    %cst_73 = arith.constant dense<0.000000e+00> : vector<8x128xf32>
    %111 = vector.multi_reduction <add>, %110, %cst_73 [0] : vector<2x8x128xf32> to vector<8x128xf32>
    %112 = arith.addf %109, %111 : vector<8x128xf32>
    %c0_74 = arith.constant 0 : index
    %c7_75 = arith.constant 7 : index
    %c0_76 = arith.constant 0 : index
    %c0_77 = arith.constant 0 : index
    %113 = vector.load %arg4[%c0_74, %c7_75, %c0_76, %c0_77] : memref<1x9x8x128xf32, #tpu.memory_space<vmem>>, vector<1x1x8x128xf32>
    %114 = vector.shape_cast %113 : vector<1x1x8x128xf32> to vector<8x128xf32>
    %115 = vector.shape_cast %112 : vector<8x128xf32> to vector<1x1x8x128xf32>
    tpu.vector_store %arg4[%c0_74, %c7_75, %c0_76, %c0_77], %115 {strides = array<i32>} : memref<1x9x8x128xf32, #tpu.memory_space<vmem>>, vector<1x1x8x128xf32>,
    %c0_78 = arith.constant 0 : index
    %c8 = arith.constant 8 : index
    %c0_79 = arith.constant 0 : index
    %c0_80 = arith.constant 0 : index
    %116 = vector.load %arg4[%c0_78, %c8, %c0_79, %c0_80] : memref<1x9x8x128xf32, #tpu.memory_space<vmem>>, vector<1x1x8x128xf32>
    %117 = vector.shape_cast %116 : vector<1x1x8x128xf32> to vector<8x128xf32>
    %118 = vector.shape_cast %51 : vector<16x128xf32> to vector<2x8x128xf32>
    %cst_81 = arith.constant dense<0.000000e+00> : vector<8x128xf32>
    %119 = vector.multi_reduction <add>, %118, %cst_81 [0] : vector<2x8x128xf32> to vector<8x128xf32>
    %120 = arith.addf %117, %119 : vector<8x128xf32>
    %c0_82 = arith.constant 0 : index
    %c8_83 = arith.constant 8 : index
    %c0_84 = arith.constant 0 : index
    %c0_85 = arith.constant 0 : index
    %121 = vector.load %arg4[%c0_82, %c8_83, %c0_84, %c0_85] : memref<1x9x8x128xf32, #tpu.memory_space<vmem>>, vector<1x1x8x128xf32>
    %122 = vector.shape_cast %121 : vector<1x1x8x128xf32> to vector<8x128xf32>
    %123 = vector.shape_cast %120 : vector<8x128xf32> to vector<1x1x8x128xf32>
    tpu.vector_store %arg4[%c0_82, %c8_83, %c0_84, %c0_85], %123 {strides = array<i32>} : memref<1x9x8x128xf32, #tpu.memory_space<vmem>>, vector<1x1x8x128xf32>,
    return
  }
  func.func @transform_0(%arg0: i32, %arg1: i32) -> (i32, i32) {
    %c1_i32 = arith.constant 1 : i32
    %0 = arith.muli %arg0, %c1_i32 : i32
    %1 = arith.addi %0, %arg1 : i32
    %c0_i32 = arith.constant 0 : i32
    %2 = arith.minsi %1, %c0_i32 : i32
    %c0_i32_0 = arith.constant 0 : i32
    %c0_i32_1 = arith.constant 0 : i32
    return %2, %c0_i32_0 : i32, i32
  }
  func.func @transform_1(%arg0: i32, %arg1: i32) -> (i32, i32) {
    %c1_i32 = arith.constant 1 : i32
    %0 = arith.muli %arg0, %c1_i32 : i32
    %1 = arith.addi %0, %arg1 : i32
    %c0_i32 = arith.constant 0 : i32
    %2 = arith.minsi %1, %c0_i32 : i32
    %c0_i32_0 = arith.constant 0 : i32
    %c0_i32_1 = arith.constant 0 : i32
    return %2, %c0_i32_0 : i32, i32
  }
  func.func @transform_2(%arg0: i32, %arg1: i32) -> (i32, i32, i32, i32) {
    %c0_i32 = arith.constant 0 : i32
    %c0_i32_0 = arith.constant 0 : i32
    %c0_i32_1 = arith.constant 0 : i32
    %c0_i32_2 = arith.constant 0 : i32
    return %arg0, %c0_i32, %c0_i32_0, %c0_i32_1 : i32, i32, i32, i32
  }
}

</mosaic_0001>

<bundles_post_ra>
// kernel: tpu_custom_call.1
= control target key start
LH: loop header
LB: loop body
LE: loop exit
PB: predicated region body
PF: predicated region fallthrough
CT: control target
= control target key end

     0   :  { %7 = vsyncpa [#allocation3], 0  ;;  %s408_s0 = inlined_call_operand.hbm [shape: f32[16,128], index: 0, kind: input, shape index: {}]   ;;  %s409_s1 = inlined_call_operand.hbm [shape: f32[16,128], index: 1, kind: input, shape index: {}]   ;;  %s410_s2 = inlined_call_operand.hbm [shape: f32[1,9,8,128], index: 2, kind: output, shape index: {}]  }
   0x1   :  { %8 = vsyncpa [#allocation6], 0 }
   0x2   :  { %9 = vsyncpa [#allocation4], 0  ;;  %s20_s11 = sshll.u32 %s408_s0, 4  ;;  %s330_s12 = smov [#allocation2]   ;;  %s21_s11 = int_to_ptr.hbm [resolvable:$true] %s20_s11 }
   0x3   :  { %s22_s13 = sshll.u32 %s330_s12, 4  ;;  %s39_s16 = sshll.u32 %s409_s1, 4  ;;  %s23_s13 = int_to_ptr.vmem [resolvable:$true] %s22_s13  ;;  %s40_s16 = int_to_ptr.hbm [resolvable:$true] %s39_s16 }
   0x4   :  { %s331_s17 = smov 128   ;;  %s332_s18 = smov 8  }
   0x5   :  { %28 = dma.hbm_to_vmem [thread:$0]  %s21_s11, 256, %s23_s13, [#allocation3], %s331_s17, %s331_s17, %s332_s18  }
   0x6   :  { %s333_s19 = smov [#allocation5]  }
   0x7   :  { %s41_s20 = sshll.u32 %s333_s19, 4  ;;  %s42_s20 = int_to_ptr.vmem [resolvable:$true] %s41_s20 }
   0x8   :  { %47 = dma.hbm_to_vmem [thread:$0]  %s40_s16, 256, %s42_s20, [#allocation6], %s331_s17, %s331_s17, %s332_s18  }
   0x9   :  { %324 = dma.done.wait [#allocation3], 256  }
   0xa   :  { %325 = vsyncadd [#allocation3], 4294967040 }
   0xb   :  { %326 = dma.done.wait [#allocation6], 256  }
   0xc   :  { %327 = vsyncadd [#allocation6], 4294967040  ;;  %v364_v0 = vld [vmem:[#allocation5] sm:$0xff]  ;;  %v366_v1 = vld [vmem:[#allocation5 + $0x8] sm:$0xff]  ;;  %v334_v6 = vmov 0.0   ;;  %vm335_vm10 = vmmov 1  }
   0xd   :  { %v77_v2 = vld [vmem:[#allocation2] sm:$0xff]  ;;  %vm81_vm0 = vcmp.gt.f32.partialorder %v364_v0, 0.1  ;;  %vm82_vm1 = vcmp.gt.f32.partialorder %v366_v1, 0.1  ;;  %v78_v3 = vld [vmem:[#allocation2 + $0x8] sm:$0xff] }
   0xe   :  { %v85_v4 = vsel %vm81_vm0, %v364_v0, 1.0  ;;  %v86_v5 = vsel %vm82_vm1, %v366_v1, 1.0  ;;  %v227_v7 = vsel %vm81_vm0, 1.0, %v334_v6  ;;  %v228_v8 = vsel %vm82_vm1, 1.0, %v334_v6  ;;  %s336_s0 = smov [#allocation7]   ;;  %s209_s23 = sshll.u32 %s410_s2, 4  ;;  %s210_s23 = int_to_ptr.hbm [resolvable:$true] %s209_s23 }
   0xf   :  { %244 = vrcp.f32 %v85_v4  ;;  %v160_v9 = vadd.f32 %v228_v8, %v227_v7  ;;  %v83_v10 = vsel %vm81_vm0, %v77_v2, 1.0  ;;  %v84_v11 = vsel %vm82_vm1, %v78_v3, 1.0  ;;  %s207_s1 = sshll.u32 %s336_s0, 4  ;;  %s208_s1 = int_to_ptr.vmem [resolvable:$true] %s207_s1 }
  0x10   :  { %246 = vrcp.f32 %v86_v5  ;;  %v101_v12 = vmax.f32 %v85_v4, %v83_v10  ;;  %v103_v13 = vmin.f32 %v85_v4, %v83_v10  ;;  %v104_v14 = vmin.f32 %v86_v5, %v84_v11 }
  0x11   :  { %v95_v15 = vsub.f32 %v85_v4, %v83_v10  ;;  %v96_v16 = vsub.f32 %v86_v5, %v84_v11  ;;  %v102_v17 = vmax.f32 %v86_v5, %v84_v11  ;;  %162 = vst [vmem:[#allocation7] sm:$0xff] %v160_v9 }
  0x12   :  { %v105_v18 = vsel %vm81_vm0, %v103_v13, 0.0  ;;  %v106_v19 = vsel %vm82_vm1, %v104_v14, 0.0 }
  0x13   :  { %v125_v20 = vmul.f32 1.25, %v105_v18  ;;  %v133_v21 = vmul.f32 1.5625, %v105_v18  ;;  %v141_v22 = vmul.f32 1.953125, %v105_v18  ;;  %v126_v23 = vmul.f32 1.25, %v106_v19 }
  0x14   :  { %v134_v24 = vmul.f32 1.5625, %v106_v19  ;;  %v142_v25 = vmul.f32 1.953125, %v106_v19  ;;  %v99_v26 = vmul.f32 %v95_v15, %v95_v15  ;;  %v100_v28 = vmul.f32 %v96_v16, %v96_v16 }
  0x15   :  { %v245_v27 = vpop.eup %244  ;;  %vm127_vm2 = vcmp.lt.f32.partialorder %v101_v12, %v125_v20  ;;  %vm135_vm3 = vcmp.lt.f32.partialorder %v101_v12, %v133_v21  ;;  %vm143_vm4 = vcmp.lt.f32.partialorder %v101_v12, %v141_v22  ;;  %vm128_vm5 = vcmp.lt.f32.partialorder %v102_v17, %v126_v23 }
  0x16   :  { %v247_v29 = vpop.eup %246  ;;  %v229_v30 = vsel %vm127_vm2, 1.0, %v334_v6  ;;  %vm136_vm6 = vcmp.lt.f32.partialorder %v102_v17, %v134_v24  ;;  %v231_v31 = vsel %vm135_vm3, 1.0, %v334_v6  ;;  %v230_v32 = vsel %vm128_vm5, 1.0, %v334_v6 }
  0x17   :  { %v232_v33 = vsel %vm136_vm6, 1.0, %v334_v6  ;;  %vm144_vm7 = vcmp.lt.f32.partialorder %v102_v17, %v142_v25  ;;  %v233_v34 = vsel %vm143_vm4, 1.0, %v334_v6  ;;  %v165_v35 = vadd.f32 %v230_v32, %v229_v30 }
  0x18   :  { %v170_v36 = vadd.f32 %v232_v33, %v231_v31  ;;  %v234_v37 = vsel %vm144_vm7, 1.0, %v334_v6  ;;  %v180_v38 = vadd.f32 %v100_v28, %v99_v26  ;;  %v89_v40 = vmul.f32 %v245_v27, %v85_v4 }
  0x19   :  { %v175_v39 = vadd.f32 %v234_v37, %v233_v34  ;;  %v90_v41 = vmul.f32 %v247_v29, %v86_v5  ;;  %v97_v42 = vand.u32 2147483647, %v95_v15  ;;  %v98_v45 = vand.u32 2147483647, %v96_v16  ;;  %167 = vst [vmem:[#allocation7 + $0x8] sm:$0xff] %v165_v35 }
  0x1a   :  { %v91_v43 = vsub.f32 2.0, %v89_v40  ;;  %172 = vst [vmem:[#allocation7 + $0x10] sm:$0xff] %v170_v36 }
  0x1b   :  { %v92_v44 = vsub.f32 2.0, %v90_v41  ;;  %177 = vst [vmem:[#allocation7 + $0x18] sm:$0xff] %v175_v39 }
  0x1c   :  { %v93_v46 = vmul.f32 %v245_v27, %v91_v43  ;;  %182 = vst [vmem:[#allocation7 + $0x20] sm:$0xff] %v180_v38 }
  0x1d   :  { %v94_v47 = vmul.f32 %v247_v29, %v92_v44 }
  0x1e   :  { %v107_v48 = vmul.f32 %v93_v46, %v83_v10  ;;  %v155_v50 = vmul.f32 %v97_v42, %v93_v46  ;;  %v157_v52 = vmul.f32 %v99_v26, %v93_v46 }
  0x1f   :  { %v108_v49 = vmul.f32 %v94_v47, %v84_v11  ;;  %v156_v51 = vmul.f32 %v98_v45, %v94_v47  ;;  %v158_v53 = vmul.f32 %v100_v28, %v94_v47 }
  0x20   :  { %248 = vlog2.f32 %v107_v48 }
  0x21   :  { %v195_v54 = vadd.f32 %v156_v51, %v155_v50  ;;  %250 = vlog2.f32 %v108_v49  ;;  %v200_v55 = vadd.f32 %v158_v53, %v157_v52 }
  0x23   :  { %197 = vst [vmem:[#allocation7 + $0x38] sm:$0xff] %v195_v54 }
  0x24   :  { %202 = vst [vmem:[#allocation7 + $0x40] sm:$0xff] %v200_v55 }
  0x26   :  { %v249_v56 = vpop.eup %248 }
  0x27   :  { %v251_v57 = vpop.eup %250  ;;  %v110_v58 = vmul.f32 0.6931472, %v249_v56 }
  0x28   :  { %v112_v59 = vmul.f32 0.6931472, %v251_v57 }
  0x29   :  { %v113_v60 = vand.u32 2147483647, %v110_v58 }
  0x2a   :  { %v114_v61 = vand.u32 2147483647, %v112_v59 }
  0x2b   :  { %vm115_vm8 = vcmp.ne.f32.partialorder %v113_v60, %v113_v60 }
  0x2c   :  { %vm116_vm9 = vcmp.ne.f32.partialorder %v114_v61, %v114_v61  ;;  %vm117_vm11 = vmxor %vm115_vm8, %vm335_vm10 }
  0x2d   :  { %vm118_vm12 = vmxor %vm116_vm9, %vm335_vm10 }
  0x2e   :  { %vm119_vm13 = vmand %vm81_vm0, %vm117_vm11 }
  0x2f   :  { %vm120_vm14 = vmand %vm82_vm1, %vm118_vm12  ;;  %v149_v62 = vsel %vm119_vm13, %v113_v60, 0.0  ;;  %v235_v63 = vsel %vm119_vm13, 1.0, %v334_v6 }
  0x30   :  { %v150_v2 = vsel %vm120_vm14, %v114_v61, 0.0  ;;  %v236_v3 = vsel %vm120_vm14, 1.0, %v334_v6 }
  0x31   :  { %v185_v4 = vadd.f32 %v150_v2, %v149_v62  ;;  %v190_v5 = vadd.f32 %v236_v3, %v235_v63 }
  0x33   :  { %187 = vst [vmem:[#allocation7 + $0x28] sm:$0xff] %v185_v4 }
  0x34   :  { %192 = vst [vmem:[#allocation7 + $0x30] sm:$0xff] %v190_v5 }
  0x35   :  { %215 = dma.vmem_to_hbm [thread:$0]  %s208_s1, 1152, %s210_s23, [#allocation4], %s331_s17, %s331_s17, %s332_s18  }
  0x36   :  { %328 = dma.done.wait [#allocation4], 1152  }
  0x37   :  { %329 = vsyncadd [#allocation4], 4294966144 }
  0x38   :  { %220 = vsyncpa [#allocation3], 1 }
  0x39   :  { %221 = vsyncpa [#allocation6], 1 }
  0x3a   :  { %222 = vsyncpa [#allocation4], 1 }

</bundles_post_ra>
